<compile_context>
chip_gen: v5e
topology: v5e:2x2
jax: 0.10.0
libtpu: 0.0.40
codegen_flags: <defaults>
</compile_context>

<pallas_src>
import functools

import jax
import jax.numpy as jnp
import numpy as np
from jax.experimental import pallas as pl
from jax.experimental.pallas import tpu as pltpu


# ----------------------------- kernels -------------------------------------


def _fused_kernel(task_ref, a_ref, x_ref, wg_ref, bg_ref, wh_ref, bh_ref, o_ref):
    """Small-graph fast path: everything resident in VMEM, single kernel."""
    del task_ref  # only used by the BlockSpec index_maps (head selection)
    xw = jnp.dot(x_ref[...], wg_ref[...], preferred_element_type=jnp.float32)
    h = jnp.dot(a_ref[...], xw.astype(jnp.bfloat16),
                preferred_element_type=jnp.float32)
    h = jnp.maximum(h + bg_ref[...], 0.0)
    logits = jnp.dot(h.astype(jnp.bfloat16), wh_ref[...],
                     preferred_element_type=jnp.float32) + bh_ref[...]
    o_ref[...] = logits.astype(o_ref.dtype)


def _xw_kernel(x_ref, wg_ref, o_ref, acc_ref):
    """Pass 1 (reassociation): XW = X @ W_arch, tiled over rows AND F_in."""
    k = pl.program_id(1)

    @pl.when(k == 0)
    def _():
        acc_ref[...] = jnp.zeros_like(acc_ref)

    acc_ref[...] += jnp.dot(x_ref[...], wg_ref[...],
                            preferred_element_type=jnp.float32)

    @pl.when(k == pl.num_programs(1) - 1)
    def _():
        o_ref[...] = acc_ref[...].astype(o_ref.dtype)


def _manager_kernel(task_ref, a_ref, xw_ref, bg_ref, wh_ref, bh_ref, o_ref,
                    acc_ref, *, tk, xw_resident):
    """Pass 2: logits = relu(A_hat @ XW + b_arch) @ W_head[task] + b_head[task].

    grid = (row tiles, K tiles); K (reduction over nodes) is the last axis.
    """
    del task_ref  # only used by the BlockSpec index_maps (head selection)
    k = pl.program_id(1)

    @pl.when(k == 0)
    def _():
        acc_ref[...] = jnp.zeros_like(acc_ref)

    if xw_resident:
        # XW is fully VMEM-resident (constant block index -> DMA'd once);
        # slice the (tk, H) panel for this reduction step in-kernel.
        off = pl.multiple_of(k * tk, 128)
        xw = xw_ref[pl.ds(off, tk), :]
    else:
        xw = xw_ref[...]

    # bf16 x bf16 -> f32 accumulation on the MXU.
    acc_ref[...] += jnp.dot(a_ref[...], xw, preferred_element_type=jnp.float32)

    @pl.when(k == pl.num_programs(1) - 1)
    def _():
        # f32 epilogue (bias + relu); runs once per row tile.  At tm >= 1024
        # consider chunking this block if regalloc starts spilling.
        h = jnp.maximum(acc_ref[...] + bg_ref[...], 0.0)
        logits = jnp.dot(h.astype(jnp.bfloat16), wh_ref[...],
                         preferred_element_type=jnp.float32) + bh_ref[...]
        o_ref[...] = logits.astype(o_ref.dtype)


# ----------------------------- helpers --------------------------------------


def _round_up(x, m):
    return (x + m - 1) // m * m


def _pad2d(x, rows, cols):
    return jnp.pad(x, ((0, rows - x.shape[0]), (0, cols - x.shape[1])))


def _pick_tile(total, pref, gran=128):
    """Largest multiple of `gran` that divides `total` and is <= pref (clamped)."""
    pref = max(min(pref, total), gran)
    best = gran
    d = gran
    while d <= pref:
        if total % d == 0:
            best = d
        d += gran
    return best


def _vmem_budget_bytes():
    """Per-generation scoped-VMEM budget (leave pipelining headroom)."""
    try:
        kind = jax.devices()[0].device_kind.lower()
    except Exception:
        kind = ""
    if "v4" in kind or "v5" in kind or "v6" in kind:
        return 96 * 1024 * 1024     # 128 MiB physical VMEM
    if "v7" in kind:
        return 44 * 1024 * 1024     # 64 MiB physical VMEM
    return 32 * 1024 * 1024         # unknown: stick to the default scoped limit


# ----------------------------- wrapper --------------------------------------


def manager_forward(a_hat, features, w_arch, b_arch, heads, task, *,
                    tm=512, tk=512, fused=None, xw_resident=None):
    """Pallas forward for Manager (arch stand-in + per-task Linear head).

    a_hat    : [N, N]     dense normalized adjacency (graph `g`)
    features : [N, F_in]  node features
    w_arch   : [F_in, H], b_arch : [1, H]
    heads    : list of (W_head [H, C_t], b_head [1, C_t])  (class_incremental)
    task     : python int task id (head *selection* happens inside the kernel
               via scalar prefetch; only the final slice uses it in Python)
    fused / xw_resident : None = auto (VMEM-budget based); bool to force.
    """
    n, f_in = features.shape
    h_dim = w_arch.shape[1]
    c_list = [w.shape[1] for (w, _) in heads]
    c_max = max(c_list)

    # 128-granular padding only (NOT tile-granular): waste bounded by <1 tile.
    f_pad = _round_up(f_in, 128)
    h_pad = _round_up(h_dim, 128)
    c_pad = _round_up(c_max, 128)       # lane-dense logits
    np_ = _round_up(n, 128)             # padded node count (rows + contraction)

    vmem_budget = _vmem_budget_bytes()

    # bf16 MXU operands, f32 biases. Zero padding keeps the math exact.
    a_p = _pad2d(a_hat, np_, np_).astype(jnp.bfloat16)
    x_p = _pad2d(features, np_, f_pad).astype(jnp.bfloat16)
    wg_p = _pad2d(w_arch, f_pad, h_pad).astype(jnp.bfloat16)
    bg_p = _pad2d(b_arch, 1, h_pad).astype(jnp.float32)
    whs = jnp.stack([_pad2d(w, h_pad, c_pad) for (w, _) in heads]).astype(jnp.bfloat16)
    bhs = jnp.stack([_pad2d(b, 1, c_pad) for (_, b) in heads]).astype(jnp.float32)
    task_arr = jnp.asarray([task], dtype=jnp.int32)

    # ---------------- fused single-call fast path (small graphs) ------------
    fused_bytes = (a_p.size * 2 + x_p.size * 2 + wg_p.size * 2 + whs.size * 2
                   + np_ * h_pad * 4 * 2           # XW + h f32 intermediates
                   + np_ * c_pad * 4 + bg_p.size * 4 + bhs.size * 4)
    if fused is None:
        fused = fused_bytes <= vmem_budget // 4
    if fused:
        logits_pad = pl.pallas_call(
            _fused_kernel,
            out_shape=jax.ShapeDtypeStruct((np_, c_pad), jnp.float32),
            grid_spec=pltpu.PrefetchScalarGridSpec(
                num_scalar_prefetch=1,
                grid=(1,),
                in_specs=[
                    pl.BlockSpec((np_, np_), lambda i, t: (0, 0)),     # A_hat
                    pl.BlockSpec((np_, f_pad), lambda i, t: (0, 0)),   # X
                    pl.BlockSpec((f_pad, h_pad), lambda i, t: (0, 0)),  # W_arch
                    pl.BlockSpec((1, h_pad), lambda i, t: (0, 0)),      # b_arch
                    pl.BlockSpec((None, h_pad, c_pad), lambda i, t: (t[0], 0, 0)),
                    pl.BlockSpec((None, 1, c_pad), lambda i, t: (t[0], 0, 0)),
                ],
                out_specs=pl.BlockSpec((np_, c_pad), lambda i, t: (0, 0)),
            ),
            compiler_params=pltpu.CompilerParams(
                dimension_semantics=("arbitrary",),
                vmem_limit_bytes=vmem_budget,
            ),
        )(task_arr, a_p, x_p, wg_p, bg_p, whs, bhs)
        return logits_pad[:n, : c_list[task]]

    # ---------------- tiled two-pass path (large graphs) --------------------
    # pass 1: XW = X @ W_arch, tiled over rows and the F_in reduction.
    tr1 = _pick_tile(np_, tm)
    tf1 = _pick_tile(f_pad, tk)
    xw = pl.pallas_call(
        _xw_kernel,
        out_shape=jax.ShapeDtypeStruct((np_, h_pad), jnp.bfloat16),
        grid_spec=pltpu.PrefetchScalarGridSpec(
            num_scalar_prefetch=0,
            grid=(np_ // tr1, f_pad // tf1),
            in_specs=[
                pl.BlockSpec((tr1, tf1), lambda i, k: (i, k)),
                pl.BlockSpec((tf1, h_pad), lambda i, k: (k, 0)),
            ],
            out_specs=pl.BlockSpec((tr1, h_pad), lambda i, k: (i, 0)),
            scratch_shapes=[pltpu.VMEM((tr1, h_pad), jnp.float32)],
        ),
        compiler_params=pltpu.CompilerParams(
            dimension_semantics=("parallel", "arbitrary"),
            vmem_limit_bytes=vmem_budget,
        ),
    )(x_p, wg_p)

    # pass 2 tile sizes: keep >=2 row tiles when possible so the "parallel"
    # row axis actually shards across both v7x TensorCores.
    tm_target = tm
    if np_ <= tm and np_ >= 2 * 128:
        tm_target = np_ // 2
    tm_ = _pick_tile(np_, tm_target)
    tk_ = _pick_tile(np_, tk)
    gi, gk = np_ // tm_, np_ // tk_

    # keep XW fully VMEM-resident (fetched once) when it fits the budget;
    # otherwise stream (tk_, H) tiles of it alongside A_hat.
    xw_bytes = np_ * h_pad * 2
    other_bytes = (2 * tm_ * tk_ * 2            # A_hat tile, double-buffered
                   + tm_ * h_pad * 4            # f32 accumulator
                   + 2 * tm_ * c_pad * 4        # output block, double-buffered
                   + 2 * (h_pad * c_pad * 2 + bg_p.size * 4 + c_pad * 4))
    if xw_resident is None:
        xw_resident = 2 * xw_bytes + other_bytes <= vmem_budget
    if xw_resident:
        xw_spec = pl.BlockSpec((np_, h_pad), lambda i, k, t: (0, 0))
    else:
        xw_spec = pl.BlockSpec((tk_, h_pad), lambda i, k, t: (k, 0))

    cost = pl.CostEstimate(
        flops=2 * np_ * np_ * h_pad + 2 * np_ * h_pad * c_pad,
        transcendentals=0,
        bytes_accessed=(a_p.size * 2
                        + (xw_bytes if xw_resident else xw_bytes * gi)
                        + whs.size * 2 + bhs.size * 4 + np_ * c_pad * 4),
    )
    grid_spec = pltpu.PrefetchScalarGridSpec(
        num_scalar_prefetch=1,
        grid=(gi, gk),
        in_specs=[
            pl.BlockSpec((tm_, tk_), lambda i, k, t: (i, k)),        # A_hat tile
            xw_spec,                                                 # XW tile / resident
            pl.BlockSpec((1, h_pad), lambda i, k, t: (0, 0)),        # b_arch
            pl.BlockSpec((None, h_pad, c_pad), lambda i, k, t: (t[0], 0, 0)),  # W_head[task]
            pl.BlockSpec((None, 1, c_pad), lambda i, k, t: (t[0], 0, 0)),      # b_head[task]
        ],
        out_specs=pl.BlockSpec((tm_, c_pad), lambda i, k, t: (i, 0)),
        scratch_shapes=[pltpu.VMEM((tm_, h_pad), jnp.float32)],
    )
    logits_pad = pl.pallas_call(
        functools.partial(_manager_kernel, tk=tk_, xw_resident=xw_resident),
        out_shape=jax.ShapeDtypeStruct((np_, c_pad), jnp.float32),
        grid_spec=grid_spec,
        compiler_params=pltpu.CompilerParams(
            dimension_semantics=("parallel", "arbitrary"),
            vmem_limit_bytes=vmem_budget,
        ),
        cost_estimate=cost,
    )(task_arr, a_p, xw, bg_p, whs, bhs)

    return logits_pad[:n, : c_list[task]]


# ----------------------------- reference & test -----------------------------


def _ref_forward(a_hat, features, w_arch, b_arch, heads, task):
    h = jnp.maximum(a_hat @ features @ w_arch + b_arch, 0.0)
    w_head, b_head = heads[task]
    return h @ w_head + b_head


def _linear_init(key, fan_in, fan_out):
    # mimic torch.nn.Linear default init: U(-1/sqrt(fan_in), 1/sqrt(fan_in))
    kw, kb = jax.random.split(key)
    bound = 1.0 / np.sqrt(fan_in)
    w = jax.random.uniform(kw, (fan_in, fan_out), jnp.float32, -bound, bound)
    b = jax.random.uniform(kb, (1, fan_out), jnp.float32, -bound, bound)
    return w, b


def _make_graph(key, n, density=0.4):
    # dense symmetric-normalized adjacency with self-loops
    adj = (jax.random.uniform(key, (n, n)) > 1.0 - density).astype(jnp.float32)
    adj = jnp.minimum(jnp.maximum(adj, adj.T) + jnp.eye(n, dtype=jnp.float32), 1.0)
    deg = jnp.sum(adj, axis=1, keepdims=True)
    return adj / jnp.sqrt(deg) / jnp.sqrt(deg).T


if __name__ == "__main__":
    key = jax.random.PRNGKey(0)
    k_a, k_x, k_arch, k_h0, k_h1, k_a2, k_x2 = jax.random.split(key, 7)

    # small shapes: N nodes, F_in raw features, in_feat hidden, taskcla classes
    N, F_IN, IN_FEAT = 8, 16, 32
    taskcla = [(0, 4, None), (1, 6, None)]  # class_incremental=True -> one head/task

    a_hat = _make_graph(k_a, N, density=0.4)
    features = jax.random.normal(k_x, (N, F_IN), jnp.float32)
    w_arch, b_arch = _linear_init(k_arch, F_IN, IN_FEAT)
    heads = [
        _linear_init(k_h0, IN_FEAT, taskcla[0][1]),
        _linear_init(k_h1, IN_FEAT, taskcla[1][1]),
    ]

    # --- small problem -> fused single-call fast path, both task heads ---
    for task in (0, 1):
        logits = manager_forward(a_hat, features, w_arch, b_arch, heads, task)
        jax.block_until_ready(logits)
        assert logits.shape == (N, taskcla[task][1])
        ref = _ref_forward(a_hat, features, w_arch, b_arch, heads, task)
        # bf16 MXU inputs -> loosened tolerance vs the f32 reference.
        np.testing.assert_allclose(np.asarray(logits), np.asarray(ref),
                                   rtol=2e-2, atol=2e-2)

    # --- larger problem -> tiled two-pass path (XW resident and streamed) ---
    N2 = 384
    a_hat2 = _make_graph(k_a2, N2, density=0.05)
    features2 = jax.random.normal(k_x2, (N2, F_IN), jnp.float32)
    ref2 = _ref_forward(a_hat2, features2, w_arch, b_arch, heads, 0)
    for resident in (True, False):
        out2 = manager_forward(a_hat2, features2, w_arch, b_arch, heads, 0,
                               fused=False, xw_resident=resident)
        jax.block_until_ready(out2)
        assert out2.shape == (N2, taskcla[0][1])
        np.testing.assert_allclose(np.asarray(out2), np.asarray(ref2),
                                   rtol=3e-2, atol=3e-2)

    print("KERNEL_OK")
</pallas_src>

<mosaic_0001>
module attributes {stable_mosaic.version = 11 : i64} {
  func.func @_fused_kernel(%arg0: i32, %arg1: memref<1xi32, #tpu.memory_space<smem>>, %arg2: memref<128x128xbf16, #tpu.memory_space<vmem>>, %arg3: memref<128x128xbf16, #tpu.memory_space<vmem>>, %arg4: memref<128x128xbf16, #tpu.memory_space<vmem>>, %arg5: memref<1x128xf32, #tpu.memory_space<vmem>>, %arg6: memref<1x128x128xbf16, #tpu.memory_space<vmem>>, %arg7: memref<1x1x128xf32, #tpu.memory_space<vmem>>, %arg8: memref<128x128xf32, #tpu.memory_space<vmem>>) attributes {dimension_semantics = [#tpu.dimension_semantics<arbitrary>], iteration_bounds = array<i64: 1>, scalar_prefetch = 1 : i64, scratch_operands = 0 : i64, tpu.core_type = #tpu.core_type<tc>, window_params = [{pipeline_mode = #tpu.pipeline_mode<synchronous>, transform_indices = @transform_0, window_bounds = array<i64: 128, 128>}, {pipeline_mode = #tpu.pipeline_mode<synchronous>, transform_indices = @transform_1, window_bounds = array<i64: 128, 128>}, {pipeline_mode = #tpu.pipeline_mode<synchronous>, transform_indices = @transform_2, window_bounds = array<i64: 128, 128>}, {pipeline_mode = #tpu.pipeline_mode<synchronous>, transform_indices = @transform_3, window_bounds = array<i64: 1, 128>}, {transform_indices = @transform_4, window_bounds = array<i64: 1, 128, 128>}, {transform_indices = @transform_5, window_bounds = array<i64: 1, 1, 128>}, {pipeline_mode = #tpu.pipeline_mode<synchronous>, transform_indices = @transform_6, window_bounds = array<i64: 128, 128>}]} {
    %c0 = arith.constant 0 : index
    %c0_0 = arith.constant 0 : index
    %0 = vector.load %arg3[%c0, %c0_0] : memref<128x128xbf16, #tpu.memory_space<vmem>>, vector<128x128xbf16>
    %c0_1 = arith.constant 0 : index
    %c0_2 = arith.constant 0 : index
    %1 = vector.load %arg4[%c0_1, %c0_2] : memref<128x128xbf16, #tpu.memory_space<vmem>>, vector<128x128xbf16>
    %cst = arith.constant dense<0.000000e+00> : vector<128x128xf32>
    %2 = tpu.matmul %0, %1, %cst {dimension_numbers = #tpu.dot_dimension_numbers<[1], [0], [0], [1], [0, 0, 1, 1], [], []>} : vector<128x128xbf16>, vector<128x128xbf16>, vector<128x128xf32> -> vector<128x128xf32>
    %c0_3 = arith.constant 0 : index
    %c0_4 = arith.constant 0 : index
    %3 = vector.load %arg2[%c0_3, %c0_4] : memref<128x128xbf16, #tpu.memory_space<vmem>>, vector<128x128xbf16>
    %4 = arith.truncf %2 : vector<128x128xf32> to vector<128x128xbf16>
    %cst_5 = arith.constant dense<0.000000e+00> : vector<128x128xf32>
    %5 = tpu.matmul %3, %4, %cst_5 {dimension_numbers = #tpu.dot_dimension_numbers<[1], [0], [0], [1], [0, 0, 1, 1], [], []>} : vector<128x128xbf16>, vector<128x128xbf16>, vector<128x128xf32> -> vector<128x128xf32>
    %c0_6 = arith.constant 0 : index
    %c0_7 = arith.constant 0 : index
    %6 = vector.load %arg5[%c0_6, %c0_7] : memref<1x128xf32, #tpu.memory_space<vmem>>, vector<1x128xf32>
    %7 = vector.broadcast %6 : vector<1x128xf32> to vector<128x128xf32>
    %8 = arith.addf %5, %7 : vector<128x128xf32>
    %cst_8 = arith.constant 0.000000e+00 : f32
    %9 = vector.broadcast %cst_8 : f32 to vector<128x128xf32>
    %10 = arith.maximumf %8, %9 : vector<128x128xf32>
    %11 = arith.truncf %10 : vector<128x128xf32> to vector<128x128xbf16>
    %c0_9 = arith.constant 0 : index
    %c0_10 = arith.constant 0 : index
    %c0_11 = arith.constant 0 : index
    %12 = vector.load %arg6[%c0_9, %c0_10, %c0_11] : memref<1x128x128xbf16, #tpu.memory_space<vmem>>, vector<1x128x128xbf16>
    %13 = vector.shape_cast %12 : vector<1x128x128xbf16> to vector<128x128xbf16>
    %cst_12 = arith.constant dense<0.000000e+00> : vector<128x128xf32>
    %14 = tpu.matmul %11, %13, %cst_12 {dimension_numbers = #tpu.dot_dimension_numbers<[1], [0], [0], [1], [0, 0, 1, 1], [], []>} : vector<128x128xbf16>, vector<128x128xbf16>, vector<128x128xf32> -> vector<128x128xf32>
    %c0_13 = arith.constant 0 : index
    %c0_14 = arith.constant 0 : index
    %c0_15 = arith.constant 0 : index
    %15 = vector.load %arg7[%c0_13, %c0_14, %c0_15] : memref<1x1x128xf32, #tpu.memory_space<vmem>>, vector<1x1x128xf32>
    %16 = vector.shape_cast %15 : vector<1x1x128xf32> to vector<1x128xf32>
    %17 = vector.broadcast %16 : vector<1x128xf32> to vector<128x128xf32>
    %18 = arith.addf %14, %17 : vector<128x128xf32>
    %c0_16 = arith.constant 0 : index
    %c0_17 = arith.constant 0 : index
    %19 = vector.load %arg8[%c0_16, %c0_17] : memref<128x128xf32, #tpu.memory_space<vmem>>, vector<128x128xf32>
    tpu.vector_store %arg8[%c0_16, %c0_17], %18 {strides = array<i32>} : memref<128x128xf32, #tpu.memory_space<vmem>>, vector<128x128xf32>,
    return
  }
  func.func @transform_0(%arg0: i32, %arg1: memref<1xi32, #tpu.memory_space<smem>>) -> (i32, i32) {
    %c0_i32 = arith.constant 0 : i32
    %c0_i32_0 = arith.constant 0 : i32
    %c0_i32_1 = arith.constant 0 : i32
    return %c0_i32, %c0_i32_0 : i32, i32
  }
  func.func @transform_1(%arg0: i32, %arg1: memref<1xi32, #tpu.memory_space<smem>>) -> (i32, i32) {
    %c0_i32 = arith.constant 0 : i32
    %c0_i32_0 = arith.constant 0 : i32
    %c0_i32_1 = arith.constant 0 : i32
    return %c0_i32, %c0_i32_0 : i32, i32
  }
  func.func @transform_2(%arg0: i32, %arg1: memref<1xi32, #tpu.memory_space<smem>>) -> (i32, i32) {
    %c0_i32 = arith.constant 0 : i32
    %c0_i32_0 = arith.constant 0 : i32
    %c0_i32_1 = arith.constant 0 : i32
    return %c0_i32, %c0_i32_0 : i32, i32
  }
  func.func @transform_3(%arg0: i32, %arg1: memref<1xi32, #tpu.memory_space<smem>>) -> (i32, i32) {
    %c0_i32 = arith.constant 0 : i32
    %c0_i32_0 = arith.constant 0 : i32
    %c0_i32_1 = arith.constant 0 : i32
    return %c0_i32, %c0_i32_0 : i32, i32
  }
  func.func @transform_4(%arg0: i32, %arg1: memref<1xi32, #tpu.memory_space<smem>>) -> (i32, i32, i32) {
    %c0 = arith.constant 0 : index
    %0 = memref.load %arg1[%c0] : memref<1xi32, #tpu.memory_space<smem>>
    %c0_i32 = arith.constant 0 : i32
    %c0_i32_0 = arith.constant 0 : i32
    %c0_i32_1 = arith.constant 0 : i32
    return %0, %c0_i32, %c0_i32_0 : i32, i32, i32
  }
  func.func @transform_5(%arg0: i32, %arg1: memref<1xi32, #tpu.memory_space<smem>>) -> (i32, i32, i32) {
    %c0 = arith.constant 0 : index
    %0 = memref.load %arg1[%c0] : memref<1xi32, #tpu.memory_space<smem>>
    %c0_i32 = arith.constant 0 : i32
    %c0_i32_0 = arith.constant 0 : i32
    %c0_i32_1 = arith.constant 0 : i32
    return %0, %c0_i32, %c0_i32_0 : i32, i32, i32
  }
  func.func @transform_6(%arg0: i32, %arg1: memref<1xi32, #tpu.memory_space<smem>>) -> (i32, i32) {
    %c0_i32 = arith.constant 0 : i32
    %c0_i32_0 = arith.constant 0 : i32
    %c0_i32_1 = arith.constant 0 : i32
    return %c0_i32, %c0_i32_0 : i32, i32
  }
}

</mosaic_0001>

<bundles_post_ra>
// kernel: tpu_custom_call.1
= control target key start
LH: loop header
LB: loop body
LE: loop exit
PB: predicated region body
PF: predicated region fallthrough
CT: control target
= control target key end

     0   :  { %13 = vsyncpa [#allocation5], 0  ;;  %s1024_s0 = inlined_call_operand.<no memory space> [shape: s32[1], index: 0, kind: input, shape index: {}]   ;;  %s1025_s1 = inlined_call_operand.hbm [shape: bf16[128,128], index: 1, kind: input, shape index: {}]   ;;  %s1026_s2 = inlined_call_operand.hbm [shape: bf16[128,128], index: 2, kind: input, shape index: {}]   ;;  %s1027_s3 = inlined_call_operand.hbm [shape: bf16[128,128], index: 3, kind: input, shape index: {}]   ;;  %s1028_s4 = inlined_call_operand.vmem [shape: f32[1,128], index: 4, kind: input, shape index: {}]   ;;  %s1029_s5 = inlined_call_operand.hbm [shape: bf16[2,128,128], index: 5, kind: input, shape index: {}]   ;;  %s1030_s6 = inlined_call_operand.vmem [shape: f32[2,1,128], index: 6, kind: input, shape index: {}]   ;;  %s1031_s7 = inlined_call_operand.hbm [shape: f32[128,128], index: 7, kind: output, shape index: {}]  }
   0x1   :  { %14 = vsyncpa [#allocation8], 0 }
   0x2   :  { %15 = vsyncpa [#allocation11], 0 }
   0x3   :  { %16 = vsyncpa [#allocation6], 0  ;;  %s34_s26 = sshll.u32 %s1026_s2, 4  ;;  %s919_s27 = smov [#allocation7]   ;;  %s35_s26 = int_to_ptr.hbm [resolvable:$true] %s34_s26 }
   0x4   :  { %s36_s28 = sshll.u32 %s919_s27, 4  ;;  %s21_s8 = sshll.u32 %s1025_s1, 4  ;;  %s37_s28 = int_to_ptr.vmem [resolvable:$true] %s36_s28  ;;  %s22_s8 = int_to_ptr.hbm [resolvable:$true] %s21_s8 }
   0x5   :  { %s920_s9 = smov 64   ;;  %s921_s10 = smov 4  }
   0x6   :  { %42 = dma.hbm_to_vmem [thread:$0]  %s35_s26, 1024, %s37_s28, [#allocation8], %s920_s9, %s920_s9, %s921_s10  }
   0x7   :  { %s922_s11 = smov [#allocation4]   ;;  %s47_s2 = sshll.u32 %s1027_s3, 4  ;;  %s48_s2 = int_to_ptr.hbm [resolvable:$true] %s47_s2 }
   0x8   :  { %s23_s12 = sshll.u32 %s922_s11, 4  ;;  %s723_s16 = sshll.u32 %s1024_s0, 6  ;;  %s24_s12 = int_to_ptr.vmem [resolvable:$true] %s23_s12 }
   0x9   :  { %29 = dma.hbm_to_vmem [thread:$0]  %s22_s8, 1024, %s24_s12, [#allocation5], %s920_s9, %s920_s9, %s921_s10  }
   0xa   :  { %s923_s17 = smov [#allocation9]   ;;  %s65_s21 = scalar_lea.hbm %s1029_s5, %s723_s16 }
   0xb   :  { %s49_s18 = sshll.u32 %s923_s17, 4  ;;  %s66_s22 = sshll.u32 %s65_s21, 4  ;;  %s50_s18 = int_to_ptr.vmem [resolvable:$true] %s49_s18  ;;  %s67_s22 = int_to_ptr.hbm [resolvable:$true] %s66_s22 }
   0xc   :  { %55 = dma.hbm_to_vmem [thread:$0]  %s48_s2, 1024, %s50_s18, [#allocation8], %s920_s9, %s920_s9, %s921_s10  }
   0xd   :  { %s924_s3 = smov [#allocation10]   ;;  %s863_s24 = sshra.s32 %s67_s22, 4  ;;  %s864_s24 = int_to_ptr.hbm [resolvable:$true] %s863_s24 }
   0xe   :  { %s68_s23 = sshll.u32 %s924_s3, 4  ;;  %s865_s25 = scalar_lea.hbm %s864_s24, 64  ;;  %s69_s23 = int_to_ptr.vmem [resolvable:$true] %s68_s23 }
   0xf   :  { %p866_p0 = scmp.ne.s32.totalorder %s864_s24, %s865_s25  ;;  %s867_s28 = scalar_lea.hbm %s1029_s5, 128 }
  0x10   :  { %p868_p1 = scmp.lt.s32.totalorder %s864_s24, %s1029_s5  ;;  %p869_p2 = scmp.lt.s32.totalorder %s867_s28, %s865_s25 }
  0x12   :  { %p870_p3 = por %p869_p2, %p868_p1 }
  0x14   :  { %p871_p4 = pnand %p870_p3, %p866_p0 }
  0x16   :  { %874 = shalt.err (!%p871_p4)
}
  0x17   :  { %74 = dma.hbm_to_vmem [thread:$0]  %s67_s22, 1024, %s69_s23, [#allocation11], %s920_s9, %s920_s9, %s921_s10  }
  0x18   :  { %911 = dma.done.wait [#allocation5], 1024  }
  0x19   :  { %912 = vsyncadd [#allocation5], 4294966272 }
  0x1a   :  { %913 = dma.done.wait [#allocation8], 2048  }
  0x1b   :  { %914 = vsyncadd [#allocation8], 4294965248 }
  0x1c   :  { %915 = dma.done.wait [#allocation11], 1024  }
  0x1d   :  { %916 = vsyncadd [#allocation11], 4294966272  ;;  %v739_v0 = vld [vmem:[#allocation9 + $0x38] sm:$0xff]  ;;  %v738_v1 = vld [vmem:[#allocation9 + $0x30] sm:$0xff]  ;;  %p104_p5 = scmp.lt.s32.totalorder %s1024_s0, 1  ;;  %s573_s17 = sshll.u32 %s1031_s7, 4  ;;  %s574_s17 = int_to_ptr.hbm [resolvable:$true] %s573_s17 }
  0x1e   :  { %236 = vmatpush.bf16.msra.mxu0 %v739_v0  ;;  %756 = vmatpush.bf16.msra.mxu3 %v739_v0  ;;  %v737_v2 = vld [vmem:[#allocation9 + $0x28] sm:$0xff]  ;;  %v736_v3 = vld [vmem:[#allocation9 + $0x20] sm:$0xff]  ;;  %v735_v4 = vld [vmem:[#allocation9 + $0x18] sm:$0xff]  ;;  %s926_s18 = smov 128   ;;  %s927_s19 = smov 8  }
  0x1f   :  { %v734_v5 = vld [vmem:[#allocation9 + $0x10] sm:$0xff]  ;;  %v733_v6 = vld [vmem:[#allocation9 + $0x8] sm:$0xff]  ;;  %v732_v7 = vld [vmem:[#allocation9] sm:$0xff]  ;;  %s1033_s0 = smov (!%p104_p5, %s1024_s0), 1 }
  0x20   :  { %v724_v8 = vld [vmem:[#allocation7] sm:$0xff]  ;;  %v730_v9 = vld [vmem:[#allocation7 + $0x30] sm:$0xff]  ;;  %v725_v10 = vld [vmem:[#allocation7 + $0x8] sm:$0xff]  ;;  %s106_s13 = scalar_lea.vmem %s1030_s6, %s1033_s0  ;;  %s925_s0 = smov [#allocation12]  }
  0x21   :  { %v731_v11 = vld [vmem:[#allocation7 + $0x38] sm:$0xff]  ;;  %v726_v12 = vld [vmem:[#allocation7 + $0x10] sm:$0xff]  ;;  %v728_v14 = vld [vmem:[#allocation7 + $0x20] sm:$0xff]  ;;  %s571_s6 = sshll.u32 %s925_s0, 4  ;;  %s572_s6 = int_to_ptr.vmem [resolvable:$true] %s571_s6 }
  0x22   :  { %237 = vmatpush.bf16.msra.mxu0 %v738_v1  ;;  %757 = vmatpush.bf16.msra.mxu3 %v738_v1  ;;  %v727_v13 = vld [vmem:[#allocation7 + $0x18] sm:$0xff]  ;;  %v729_v15 = vld [vmem:[#allocation7 + $0x28] sm:$0xff]  ;;  %v740_v40 = vld [vmem:[#allocation4] sm:$0xff] }
  0x23   :  { %v746_v41 = vld [vmem:[#allocation4 + $0x30] sm:$0xff]  ;;  %v741_v42 = vld [vmem:[#allocation4 + $0x8] sm:$0xff]  ;;  %v747_v43 = vld [vmem:[#allocation4 + $0x38] sm:$0xff] }
  0x24   :  { %v742_v44 = vld [vmem:[#allocation4 + $0x10] sm:$0xff]  ;;  %v743_v45 = vld [vmem:[#allocation4 + $0x18] sm:$0xff]  ;;  %v753_v48 = vld [vmem:[#allocation10 + $0x28] sm:$0xff] }
  0x25   :  { %v755_v46 = vld [vmem:[#allocation10 + $0x38] sm:$0xff]  ;;  %v754_v47 = vld [vmem:[#allocation10 + $0x30] sm:$0xff]  ;;  %v752_v49 = vld [vmem:[#allocation10 + $0x20] sm:$0xff] }
  0x26   :  { %238 = vmatpush.bf16.msra.mxu0 %v737_v2  ;;  %758 = vmatpush.bf16.msra.mxu3 %v737_v2  ;;  %v744_v50 = vld [vmem:[#allocation4 + $0x20] sm:$0xff]  ;;  %v745_v51 = vld [vmem:[#allocation4 + $0x28] sm:$0xff]  ;;  %v751_v52 = vld [vmem:[#allocation10 + $0x18] sm:$0xff] }
  0x27   :  { %502 = vmatpush.bf16.msra.mxu2 %v755_v46  ;;  %v750_v53 = vld [vmem:[#allocation10 + $0x10] sm:$0xff]  ;;  %v749_v54 = vld [vmem:[#allocation10 + $0x8] sm:$0xff]  ;;  %v748_v55 = vld [vmem:[#allocation10] sm:$0xff] }
  0x28   :  { %v789_v57 = vld [vmem:[%s1028_s4] ss:$0 sm:$0xff] }
  0x2a   :  { %239 = vmatpush.bf16.msra.mxu0 %v736_v3  ;;  %759 = vmatpush.bf16.msra.mxu3 %v736_v3 }
  0x2b   :  { %503 = vmatpush.bf16.msra.mxu2 %v754_v47 }
  0x2e   :  { %240 = vmatpush.bf16.msra.mxu0 %v735_v4  ;;  %760 = vmatpush.bf16.msra.mxu3 %v735_v4 }
  0x2f   :  { %504 = vmatpush.bf16.msra.mxu2 %v753_v48 }
  0x32   :  { %241 = vmatpush.bf16.msra.mxu0 %v734_v5  ;;  %761 = vmatpush.bf16.msra.mxu3 %v734_v5 }
  0x33   :  { %505 = vmatpush.bf16.msra.mxu2 %v752_v49 }
  0x36   :  { %242 = vmatpush.bf16.msra.mxu0 %v733_v6  ;;  %762 = vmatpush.bf16.msra.mxu3 %v733_v6 }
  0x37   :  { %506 = vmatpush.bf16.msra.mxu2 %v751_v52 }
  0x3a   :  { %243 = vmatpush.bf16.msra.mxu0 %v732_v7  ;;  %763 = vmatpush.bf16.msra.mxu3 %v732_v7 }
  0x3b   :  { %507 = vmatpush.bf16.msra.mxu2 %v750_v53 }
  0x3d   :  { %244 = vmatmul.bf16.vlgmr.msra.gmra.mxu0 %v724_v8  ;;  %274 = vmatmul.bf16.vlgmr.msra.gmra.mxu3 %v730_v9 }
  0x3f   :  { %508 = vmatpush.bf16.msra.mxu2 %v749_v54 }
  0x43   :  { %509 = vmatpush.bf16.msra.mxu2 %v748_v55 }
  0x4d   :  { %249 = vmatmul.bf16.gmra.mxu0 %v725_v10  ;;  %279 = vmatmul.bf16.gmra.mxu3 %v731_v11 }
  0x5d   :  { %254 = vmatmul.bf16.gmra.mxu0 %v726_v12 }
  0x6d   :  { %259 = vmatmul.bf16.gmra.mxu0 %v727_v13 }
  0x7d   :  { %264 = vmatmul.bf16.gmra.mxu0 %v728_v14 }
  0x8d   :  { %269 = vmatmul.bf16.gmra.mxu0 %v729_v15 }
  0xba   :  { %v245_v16 = vpop.f32.mrf.mxu0 }
  0xc0   :  { %v275_v17 = vpop.f32.mrf.mxu3 }
  0xc2   :  { %v247_v18 = vpop.f32.mrf.mxu0 }
  0xc3   :  { %v301_v19 = vpack.c.bf16 %v247_v18, %v245_v16 }
  0xc8   :  { %v277_v20 = vpop.f32.mrf.mxu3 }
  0xc9   :  { %v307_v28 = vpack.c.bf16 %v277_v20, %v275_v17 }
  0xca   :  { %v250_v21 = vpop.f32.mrf.mxu0 }
  0xd0   :  { %v280_v22 = vpop.f32.mrf.mxu3 }
  0xd2   :  { %v252_v23 = vpop.f32.mrf.mxu0 }
  0xd3   :  { %v302_v24 = vpack.c.bf16 %v252_v23, %v250_v21 }
  0xd8   :  { %v282_v25 = vpop.f32.mrf.mxu3 }
  0xd9   :  { %v308_v26 = vpack.c.bf16 %v282_v25, %v280_v22 }
  0xda   :  { %v255_v27 = vpop.f32.mrf.mxu0 }
  0xdb   :  { %361 = vmatpush.bf16.msra.mxu1 %v308_v26  ;;  %764 = vmatpush.bf16.msrb.mxu3 %v308_v26 }
  0xdf   :  { %362 = vmatpush.bf16.msra.mxu1 %v307_v28  ;;  %765 = vmatpush.bf16.msrb.mxu3 %v307_v28 }
  0xe2   :  { %v257_v29 = vpop.f32.mrf.mxu0 }
  0xe3   :  { %v303_v39 = vpack.c.bf16 %v257_v29, %v255_v27 }
  0xea   :  { %v260_v30 = vpop.f32.mrf.mxu0 }
  0xf2   :  { %v262_v31 = vpop.f32.mrf.mxu0 }
  0xf3   :  { %v304_v38 = vpack.c.bf16 %v262_v31, %v260_v30 }
  0xfa   :  { %v265_v32 = vpop.f32.mrf.mxu0 }
 0x102   :  { %v267_v33 = vpop.f32.mrf.mxu0 }
 0x103   :  { %v305_v37 = vpack.c.bf16 %v267_v33, %v265_v32 }
 0x10a   :  { %v270_v34 = vpop.f32.mrf.mxu0 }
 0x112   :  { %v272_v35 = vpop.f32.mrf.mxu0 }
 0x113   :  { %v306_v36 = vpack.c.bf16 %v272_v35, %v270_v34 }
 0x115   :  { %363 = vmatpush.bf16.msra.mxu1 %v306_v36  ;;  %766 = vmatpush.bf16.msrb.mxu3 %v306_v36 }
 0x119   :  { %364 = vmatpush.bf16.msra.mxu1 %v305_v37  ;;  %767 = vmatpush.bf16.msrb.mxu3 %v305_v37 }
 0x11d   :  { %365 = vmatpush.bf16.msra.mxu1 %v304_v38  ;;  %768 = vmatpush.bf16.msrb.mxu3 %v304_v38 }
 0x121   :  { %366 = vmatpush.bf16.msra.mxu1 %v303_v39  ;;  %769 = vmatpush.bf16.msrb.mxu3 %v303_v39 }
 0x125   :  { %367 = vmatpush.bf16.msra.mxu1 %v302_v24  ;;  %770 = vmatpush.bf16.msrb.mxu3 %v302_v24 }
 0x129   :  { %368 = vmatpush.bf16.msra.mxu1 %v301_v19  ;;  %771 = vmatpush.bf16.msrb.mxu3 %v301_v19 }
 0x12c   :  { %369 = vmatmul.bf16.vlgmr.msra.gmra.mxu1 %v740_v40  ;;  %399 = vmatmul.bf16.vlgmr.msrb.gmra.mxu3 %v746_v41 }
 0x12d   :  { %772 = vmatpush.bf16.msra.mxu3 %v755_v46 }
 0x131   :  { %773 = vmatpush.bf16.msra.mxu3 %v754_v47 }
 0x135   :  { %774 = vmatpush.bf16.msra.mxu3 %v753_v48 }
 0x139   :  { %775 = vmatpush.bf16.msra.mxu3 %v752_v49  ;;  %v790_v49 = vld [vmem:[%s106_s13] ss:$0 sm:$0xff] }
 0x13c   :  { %374 = vmatmul.bf16.gmra.mxu1 %v741_v42  ;;  %404 = vmatmul.bf16.gmra.mxu3 %v747_v43 }
 0x13d   :  { %776 = vmatpush.bf16.msra.mxu3 %v751_v52 }
 0x141   :  { %777 = vmatpush.bf16.msra.mxu3 %v750_v53 }
 0x145   :  { %778 = vmatpush.bf16.msra.mxu3 %v749_v54 }
 0x149   :  { %779 = vmatpush.bf16.msra.mxu3 %v748_v55 }
 0x14c   :  { %379 = vmatmul.bf16.gmra.mxu1 %v742_v44 }
 0x15c   :  { %384 = vmatmul.bf16.gmra.mxu1 %v743_v45 }
 0x16c   :  { %389 = vmatmul.bf16.gmra.mxu1 %v744_v50 }
 0x17c   :  { %394 = vmatmul.bf16.gmra.mxu1 %v745_v51 }
 0x1a9   :  { %v370_v56 = vpop.f32.mrf.mxu1 }
 0x1aa   :  { %v371_v58 = vadd.f32 %v789_v57, %v370_v56 }
 0x1ac   :  { %v410_v61 = vmax.f32 %v371_v58, 0.0 }
 0x1af   :  { %v400_v1 = vpop.f32.mrf.mxu3 }
 0x1b0   :  { %v401_v2 = vadd.f32 %v789_v57, %v400_v1 }
 0x1b1   :  { %v372_v59 = vpop.f32.mrf.mxu1 }
 0x1b2   :  { %v373_v60 = vadd.f32 %v789_v57, %v372_v59  ;;  %v422_v7 = vmax.f32 %v401_v2, 0.0 }
 0x1b4   :  { %v411_v62 = vmax.f32 %v373_v60, 0.0 }
 0x1b6   :  { %v426_v63 = vpack.c.bf16 %v411_v62, %v410_v61 }
 0x1b7   :  { %v402_v5 = vpop.f32.mrf.mxu3 }
 0x1b8   :  { %510 = vmatmul.bf16.vlgmr.msra.gmra.mxu2 %v426_v63  ;;  %v403_v8 = vadd.f32 %v789_v57, %v402_v5 }
 0x1b9   :  { %v375_v0 = vpop.f32.mrf.mxu1 }
 0x1ba   :  { %v376_v3 = vadd.f32 %v789_v57, %v375_v0  ;;  %v423_v11 = vmax.f32 %v403_v8, 0.0 }
 0x1bc   :  { %v412_v9 = vmax.f32 %v376_v3, 0.0  ;;  %v432_v13 = vpack.c.bf16 %v423_v11, %v422_v7 }
 0x1be   :  { %540 = vmatmul.bf16.vlgmr.msra.gmra.mxu3 %v432_v13 }
 0x1bf   :  { %v405_v15 = vpop.f32.mrf.mxu3 }
 0x1c0   :  { %v406_v16 = vadd.f32 %v789_v57, %v405_v15 }
 0x1c1   :  { %v377_v4 = vpop.f32.mrf.mxu1 }
 0x1c2   :  { %v378_v6 = vadd.f32 %v789_v57, %v377_v4  ;;  %v424_v21 = vmax.f32 %v406_v16, 0.0 }
 0x1c4   :  { %v413_v10 = vmax.f32 %v378_v6, 0.0 }
 0x1c6   :  { %v427_v12 = vpack.c.bf16 %v413_v10, %v412_v9 }
 0x1c7   :  { %v407_v19 = vpop.f32.mrf.mxu3 }
 0x1c8   :  { %515 = vmatmul.bf16.gmra.mxu2 %v427_v12  ;;  %v408_v22 = vadd.f32 %v789_v57, %v407_v19 }
 0x1c9   :  { %v380_v14 = vpop.f32.mrf.mxu1 }
 0x1ca   :  { %v381_v17 = vadd.f32 %v789_v57, %v380_v14  ;;  %v425_v25 = vmax.f32 %v408_v22, 0.0 }
 0x1cc   :  { %v414_v23 = vmax.f32 %v381_v17, 0.0  ;;  %v433_v27 = vpack.c.bf16 %v425_v25, %v424_v21 }
 0x1ce   :  { %545 = vmatmul.bf16.gmra.mxu3 %v433_v27 }
 0x1d1   :  { %v382_v18 = vpop.f32.mrf.mxu1 }
 0x1d2   :  { %v383_v20 = vadd.f32 %v789_v57, %v382_v18 }
 0x1d4   :  { %v415_v24 = vmax.f32 %v383_v20, 0.0 }
 0x1d6   :  { %v428_v26 = vpack.c.bf16 %v415_v24, %v414_v23 }
 0x1d8   :  { %520 = vmatmul.bf16.gmra.mxu2 %v428_v26 }
 0x1d9   :  { %v385_v28 = vpop.f32.mrf.mxu1 }
 0x1da   :  { %v386_v29 = vadd.f32 %v789_v57, %v385_v28 }
 0x1dc   :  { %v416_v32 = vmax.f32 %v386_v29, 0.0 }
 0x1e1   :  { %v387_v30 = vpop.f32.mrf.mxu1 }
 0x1e2   :  { %v388_v31 = vadd.f32 %v789_v57, %v387_v30 }
 0x1e4   :  { %v417_v33 = vmax.f32 %v388_v31, 0.0 }
 0x1e6   :  { %v429_v34 = vpack.c.bf16 %v417_v33, %v416_v32 }
 0x1e8   :  { %525 = vmatmul.bf16.gmra.mxu2 %v429_v34 }
 0x1e9   :  { %v390_v35 = vpop.f32.mrf.mxu1 }
 0x1ea   :  { %v391_v36 = vadd.f32 %v789_v57, %v390_v35 }
 0x1ec   :  { %v418_v39 = vmax.f32 %v391_v36, 0.0 }
 0x1f1   :  { %v392_v37 = vpop.f32.mrf.mxu1 }
 0x1f2   :  { %v393_v38 = vadd.f32 %v789_v57, %v392_v37 }
 0x1f4   :  { %v419_v40 = vmax.f32 %v393_v38, 0.0 }
 0x1f6   :  { %v430_v41 = vpack.c.bf16 %v419_v40, %v418_v39 }
 0x1f8   :  { %530 = vmatmul.bf16.gmra.mxu2 %v430_v41 }
 0x1f9   :  { %v395_v42 = vpop.f32.mrf.mxu1 }
 0x1fa   :  { %v396_v43 = vadd.f32 %v789_v57, %v395_v42 }
 0x1fc   :  { %v420_v46 = vmax.f32 %v396_v43, 0.0 }
 0x201   :  { %v397_v44 = vpop.f32.mrf.mxu1 }
 0x202   :  { %v398_v45 = vadd.f32 %v789_v57, %v397_v44 }
 0x204   :  { %v421_v47 = vmax.f32 %v398_v45, 0.0 }
 0x206   :  { %v431_v48 = vpack.c.bf16 %v421_v47, %v420_v46 }
 0x208   :  { %535 = vmatmul.bf16.gmra.mxu2 %v431_v48 }
 0x23b   :  { %v511_v50 = vpop.f32.mrf.mxu2 }
 0x23c   :  { %v512_v51 = vadd.f32 %v790_v49, %v511_v50 }
 0x23e   :  { %551 = vst [vmem:[#allocation12] sm:$0xff] %v512_v51 }
 0x241   :  { %v541_v55 = vpop.f32.mrf.mxu3 }
 0x242   :  { %v542_v57 = vadd.f32 %v790_v49, %v541_v55 }
 0x243   :  { %v513_v52 = vpop.f32.mrf.mxu2 }
 0x244   :  { %v514_v53 = vadd.f32 %v790_v49, %v513_v52  ;;  %563 = vst [vmem:[#allocation12 + $0x60] sm:$0xff] %v542_v57 }
 0x246   :  { %552 = vst [vmem:[#allocation12 + $0x8] sm:$0xff] %v514_v53 }
 0x249   :  { %v543_v59 = vpop.f32.mrf.mxu3 }
 0x24a   :  { %v544_v61 = vadd.f32 %v790_v49, %v543_v59 }
 0x24b   :  { %v516_v54 = vpop.f32.mrf.mxu2 }
 0x24c   :  { %v517_v56 = vadd.f32 %v790_v49, %v516_v54  ;;  %564 = vst [vmem:[#allocation12 + $0x68] sm:$0xff] %v544_v61 }
 0x24e   :  { %553 = vst [vmem:[#allocation12 + $0x10] sm:$0xff] %v517_v56 }
 0x251   :  { %v546_v63 = vpop.f32.mrf.mxu3 }
 0x252   :  { %v547_v1 = vadd.f32 %v790_v49, %v546_v63 }
 0x253   :  { %v518_v58 = vpop.f32.mrf.mxu2 }
 0x254   :  { %v519_v60 = vadd.f32 %v790_v49, %v518_v58  ;;  %565 = vst [vmem:[#allocation12 + $0x70] sm:$0xff] %v547_v1 }
 0x256   :  { %554 = vst [vmem:[#allocation12 + $0x18] sm:$0xff] %v519_v60 }
 0x259   :  { %v548_v3 = vpop.f32.mrf.mxu3 }
 0x25a   :  { %v549_v5 = vadd.f32 %v790_v49, %v548_v3 }
 0x25b   :  { %v521_v62 = vpop.f32.mrf.mxu2 }
 0x25c   :  { %v522_v0 = vadd.f32 %v790_v49, %v521_v62  ;;  %566 = vst [vmem:[#allocation12 + $0x78] sm:$0xff] %v549_v5 }
 0x25e   :  { %555 = vst [vmem:[#allocation12 + $0x20] sm:$0xff] %v522_v0 }
 0x263   :  { %v523_v2 = vpop.f32.mrf.mxu2 }
 0x264   :  { %v524_v4 = vadd.f32 %v790_v49, %v523_v2 }
 0x266   :  { %556 = vst [vmem:[#allocation12 + $0x28] sm:$0xff] %v524_v4 }
 0x26b   :  { %v526_v6 = vpop.f32.mrf.mxu2 }
 0x26c   :  { %v527_v7 = vadd.f32 %v790_v49, %v526_v6 }
 0x26e   :  { %557 = vst [vmem:[#allocation12 + $0x30] sm:$0xff] %v527_v7 }
 0x273   :  { %v528_v8 = vpop.f32.mrf.mxu2 }
 0x274   :  { %v529_v9 = vadd.f32 %v790_v49, %v528_v8 }
 0x276   :  { %558 = vst [vmem:[#allocation12 + $0x38] sm:$0xff] %v529_v9 }
 0x27b   :  { %v531_v10 = vpop.f32.mrf.mxu2 }
 0x27c   :  { %v532_v11 = vadd.f32 %v790_v49, %v531_v10 }
 0x27e   :  { %559 = vst [vmem:[#allocation12 + $0x40] sm:$0xff] %v532_v11 }
 0x283   :  { %v533_v12 = vpop.f32.mrf.mxu2 }
 0x284   :  { %v534_v13 = vadd.f32 %v790_v49, %v533_v12 }
 0x286   :  { %560 = vst [vmem:[#allocation12 + $0x48] sm:$0xff] %v534_v13 }
 0x28b   :  { %v536_v14 = vpop.f32.mrf.mxu2 }
 0x28c   :  { %v537_v15 = vadd.f32 %v790_v49, %v536_v14 }
 0x28e   :  { %561 = vst [vmem:[#allocation12 + $0x50] sm:$0xff] %v537_v15 }
 0x293   :  { %v538_v16 = vpop.f32.mrf.mxu2 }
 0x294   :  { %v539_v17 = vadd.f32 %v790_v49, %v538_v16 }
 0x296   :  { %562 = vst [vmem:[#allocation12 + $0x58] sm:$0xff] %v539_v17 }
 0x297   :  { %579 = dma.vmem_to_hbm [thread:$0]  %s572_s6, 2048, %s574_s17, [#allocation6], %s926_s18, %s926_s18, %s927_s19  }
 0x298   :  { %917 = dma.done.wait [#allocation6], 2048  }
 0x299   :  { %918 = vsyncadd [#allocation6], 4294965248 }
 0x29a   :  { %584 = vsyncpa [#allocation5], 1 }
 0x29b   :  { %585 = vsyncpa [#allocation8], 1 }
 0x29c   :  { %586 = vsyncpa [#allocation11], 1 }
 0x29d   :  { %587 = vsyncpa [#allocation6], 1 }

</bundles_post_ra>
